<compile_context>
chip_gen: v7x
topology: tpu7x:2x2x1
jax: 0.10.0
libtpu: 0.0.40
codegen_flags: <defaults>
</compile_context>

<pallas_src>
import functools

import jax
import jax.numpy as jnp
from jax.experimental import pallas as pl
from jax.experimental.pallas import tpu as pltpu


# ------------------------------ helpers ------------------------------------ #
def _pick_tile(n, tile_n, mult):
    """Largest multiple of `mult` that is <= min(tile_n, n) (floor of `mult`)."""
    return max(mult, (min(tile_n, n) // mult) * mult)


def _vmem_limit(bytes_estimate):
    """2x headroom over the estimate, kept under v7x's 64 MiB physical VMEM."""
    return int(min(max(2 * bytes_estimate, 32 * 1024 * 1024),
                   56 * 1024 * 1024))


def _param_specs(shapes):
    """Weights/biases are tiny and VMEM-resident.  Block == full array, so the
    (8,128) divisibility rule is satisfied regardless of the small dims."""
    return [pl.BlockSpec(s, lambda i: (0, 0)) for s in shapes]


# ----------------------------- Pallas kernels ------------------------------ #
def _seg_logits_kernel(feat_ref, w1_ref, b1_ref, w2_ref, b2_ref, out_ref):
    """Eval path, channels-last: (tile, C_in) bf16 feat -> (tile, K) logits.
    Ragged tail rows produce garbage but their store is masked by Pallas."""
    feat = feat_ref[...].astype(jnp.float32)     # bf16 HBM stream -> f32 math
    h = jnp.dot(feat, w1_ref[...], preferred_element_type=jnp.float32)
    h = jnp.maximum(h + b1_ref[...], 0.0)        # bias + ReLU on the VPU
    logits = jnp.dot(h, w2_ref[...], preferred_element_type=jnp.float32)
    out_ref[...] = (logits + b2_ref[...]).astype(out_ref.dtype)


def _fused_loss_kernel(seg_ref, feat_ref, w1t_ref, b1t_ref, w2t_ref, b2t_ref,
                       out_ref, *, n_total):
    """Fused MLP + cross-entropy, channels-first (points on the 128-lane axis).

    Blocks: seg (1, tile) i32, feat (C_in, tile) bf16, out (1, 128) f32.
    Each grid step is independent ("parallel"); its (1,128) output block is
    filled with the block's NLL partial sum (column 0 is read back in JAX).
    Logits never leave VMEM.
    """
    i = pl.program_id(0)
    tile = seg_ref.shape[1]

    feat = feat_ref[...].astype(jnp.float32)                     # (C_in, tile)
    h = jnp.dot(w1t_ref[...], feat, preferred_element_type=jnp.float32)
    h = jnp.maximum(h + b1t_ref[...], 0.0)                       # (H, tile)
    logits = jnp.dot(w2t_ref[...], h, preferred_element_type=jnp.float32)
    logits = logits + b2t_ref[...]                               # (K, tile)
    k = logits.shape[0]

    # log-sum-exp over classes (sublane axis); exp/log ride the EUP slot.
    m = jnp.max(logits, axis=0, keepdims=True)                   # (1, tile)
    lse = m + jnp.log(jnp.sum(jnp.exp(logits - m), axis=0, keepdims=True))

    # Picked logit via one-hot compare (no gather needed on TPU).
    cls = jax.lax.broadcasted_iota(jnp.int32, (k, tile), 0)
    onehot = cls == seg_ref[...]                                 # (K,t) vs (1,t)
    picked = jnp.sum(jnp.where(onehot, logits, 0.0), axis=0, keepdims=True)

    # Ragged tail: keep the SELECT form (tail columns hold garbage feat/labels;
    # a multiplicative mask could NaN-poison the sum).
    cols = i * tile + jax.lax.broadcasted_iota(jnp.int32, (1, tile), 1)
    nll = jnp.where(cols < n_total, lse - picked, 0.0)           # (1, tile)

    block_sum = jnp.sum(nll)                                     # cross-lane reduce
    out_ref[...] = jnp.full((1, 128), block_sum, jnp.float32)


# ------------------------------ wrappers ------------------------------------ #
def pcd_backbone_forward(feat, w1, b1, w2, b2, *, tile_n=8192,
                         out_dtype=jnp.bfloat16):
    """seg_logits (N, K) = relu(feat @ W1 + b1) @ W2 + b2, tiled over points."""
    n, c_in = feat.shape
    hidden = w1.shape[1]
    num_classes = w2.shape[1]

    feat = feat.astype(jnp.bfloat16)            # narrow the HBM read stream
    tile = _pick_tile(n, tile_n, 8)
    grid = (pl.cdiv(n, tile),)                  # ragged tail: masked tail store

    out_bytes = jnp.dtype(out_dtype).itemsize
    # Channels-last blocks pad their last dim to 128 lanes in VMEM:
    # 2 feat buffers (bf16) + 2 out buffers + f32 activation scratch.
    vmem_est = tile * 128 * (2 * 2 + 2 * out_bytes + 12)
    cost = pl.CostEstimate(
        flops=2 * n * (c_in * hidden + hidden * num_classes),
        transcendentals=0,
        bytes_accessed=n * (2 * c_in + out_bytes * num_classes))

    return pl.pallas_call(
        _seg_logits_kernel,
        out_shape=jax.ShapeDtypeStruct((n, num_classes), out_dtype),
        grid=grid,
        in_specs=[pl.BlockSpec((tile, c_in), lambda i: (i, 0))]
        + _param_specs([(c_in, hidden), (1, hidden),
                        (hidden, num_classes), (1, num_classes)]),
        out_specs=pl.BlockSpec((tile, num_classes), lambda i: (i, 0)),
        compiler_params=pltpu.CompilerParams(
            dimension_semantics=("parallel",),          # megacore split on v7x
            vmem_limit_bytes=_vmem_limit(vmem_est)),
        cost_estimate=cost,
    )(feat, w1, b1, w2, b2)


def pcd_backbone_loss(feat, segment, w1, b1, w2, b2, *, tile_n=32768):
    """Mean cross-entropy of the seg head, fused (no logits HBM round trip)."""
    n, c_in = feat.shape
    hidden = w1.shape[1]
    num_classes = w2.shape[1]

    # Channels-first: points ride the 128-lane axis (lane-dense vregs / VMEM).
    feat_cf = feat.astype(jnp.bfloat16).T                 # (C_in, N)
    seg_row = segment.astype(jnp.int32).reshape(1, n)     # (1, N)
    w1t, b1t = w1.T, b1.reshape(hidden, 1)
    w2t, b2t = w2.T, b2.reshape(num_classes, 1)

    tile = _pick_tile(n, tile_n, 128)
    grid_n = pl.cdiv(n, tile)

    # Channels-first VMEM per point: feat (<=16 bf16 sublanes) + labels (8 i32
    # sublanes), double buffered, plus f32 activation scratch (h/logits/exp).
    vmem_est = tile * (2 * (16 * 2 + 8 * 4) + 320)
    cost = pl.CostEstimate(
        flops=2 * n * (c_in * hidden + hidden * num_classes),
        transcendentals=n * (num_classes + 1),
        bytes_accessed=n * (2 * c_in + 4) + grid_n * 128 * 4)

    partials = pl.pallas_call(
        functools.partial(_fused_loss_kernel, n_total=n),
        out_shape=jax.ShapeDtypeStruct((1, grid_n * 128), jnp.float32),
        grid=(grid_n,),
        in_specs=[pl.BlockSpec((1, tile), lambda i: (0, i)),       # labels
                  pl.BlockSpec((c_in, tile), lambda i: (0, i))]    # feat (C,N)
        + _param_specs([(hidden, c_in), (hidden, 1),
                        (num_classes, hidden), (num_classes, 1)]),
        out_specs=pl.BlockSpec((1, 128), lambda i: (0, i)),
        compiler_params=pltpu.CompilerParams(
            dimension_semantics=("parallel",),          # both v7x TCs used
            vmem_limit_bytes=_vmem_limit(vmem_est)),
        cost_estimate=cost,
    )(seg_row, feat_cf, w1t, b1t, w2t, b2t)

    # Column 0 of each (1, 128) block holds that block's NLL partial sum.
    return jnp.sum(partials.reshape(grid_n, 128)[:, 0]) / n


# ------------------------- Segmentor (glue in JAX) -------------------------- #
class DefaultInteractiveSegmentorPallas:
    """JAX/Pallas mirror of DefaultInteractiveSegmentor's usable forward path."""

    def __init__(self, in_channels, hidden_channels, num_classes, key,
                 logits_dtype=jnp.bfloat16):
        k1, k2, k3, k4 = jax.random.split(key, 4)
        s1 = 1.0 / jnp.sqrt(jnp.float32(in_channels))
        s2 = 1.0 / jnp.sqrt(jnp.float32(hidden_channels))
        self.w1 = jax.random.uniform(k1, (in_channels, hidden_channels),
                                     jnp.float32, -s1, s1)
        self.b1 = jax.random.uniform(k2, (1, hidden_channels),
                                     jnp.float32, -s1, s1)
        self.w2 = jax.random.uniform(k3, (hidden_channels, num_classes),
                                     jnp.float32, -s2, s2)
        self.b2 = jax.random.uniform(k4, (1, num_classes),
                                     jnp.float32, -s2, s2)
        # bf16 seg_logits by default (HBM-traffic win); pass jnp.float32 for
        # bit-strict downstream consumers.
        self.logits_dtype = logits_dtype
        self.training = False

    def forward_pcd(self, pcd_dict):
        """仅点云推理 — backbone seg head runs in the Pallas kernel."""
        seg_logits = pcd_backbone_forward(
            pcd_dict["feat"], self.w1, self.b1, self.w2, self.b2,
            out_dtype=self.logits_dtype)
        return dict(seg_logits=seg_logits)

    def _criteria(self, feat, segment):
        # Cross-entropy criteria (mean over points), computed with the fused
        # channels-first kernel directly from feat — the HBM seg_logits are
        # never re-read on the eval-with-labels path.
        return pcd_backbone_loss(feat, segment, self.w1, self.b1, self.w2,
                                 self.b2)

    def __call__(self, input_dict):
        pcd_dict = input_dict["pcd_dict"]
        if self.training:
            # Fused kernel: seg_logits never written to HBM on the training path.
            loss = self._criteria(pcd_dict["feat"], input_dict["segment"])
            return dict(loss=loss)
        seg_logits = self.forward_pcd(pcd_dict)["seg_logits"]
        if "segment" in input_dict:
            loss = self._criteria(pcd_dict["feat"], input_dict["segment"])
            return dict(loss=loss, seg_logits=seg_logits)
        return dict(seg_logits=seg_logits)


# ---------------------------------- main ----------------------------------- #
if __name__ == "__main__":
    key = jax.random.PRNGKey(0)
    k_feat, k_seg, k_params = jax.random.split(key, 3)

    # Small point-cloud dict: N points with 6-dim features (xyz + rgb).
    N, C_IN, HIDDEN, NUM_CLASSES = 256, 6, 32, 13
    feat = jax.random.normal(k_feat, (N, C_IN), jnp.float32)
    segment = jax.random.randint(k_seg, (N,), 0, NUM_CLASSES, jnp.int32)

    model = DefaultInteractiveSegmentorPallas(C_IN, HIDDEN, NUM_CLASSES, k_params)
    input_dict = {"pcd_dict": {"feat": feat}, "segment": segment}

    # Eval path: bf16 seg_logits + fused criteria loss.
    out = model(input_dict)
    jax.block_until_ready(out["seg_logits"])
    jax.block_until_ready(out["loss"])

    # Training path: fused loss kernel (no logits written to HBM).
    model.training = True
    train_out = model(input_dict)
    jax.block_until_ready(train_out["loss"])
    model.training = False

    # Reference check (plain JAX) against the same bf16-quantized feat the
    # kernels stream from HBM.
    feat_q = feat.astype(jnp.bfloat16).astype(jnp.float32)
    ref_logits = jnp.maximum(feat_q @ model.w1 + model.b1, 0.0) @ model.w2 + model.b2
    ref_logz = jax.nn.logsumexp(ref_logits, axis=-1)
    ref_pick = jnp.take_along_axis(ref_logits, segment[:, None], axis=-1)[:, 0]
    ref_loss = jnp.mean(ref_logz - ref_pick)

    assert out["seg_logits"].shape == (N, NUM_CLASSES)
    assert out["seg_logits"].dtype == jnp.bfloat16
    # Logits are emitted in bf16 (documented precision trade-off).
    assert jnp.allclose(out["seg_logits"].astype(jnp.float32), ref_logits,
                        atol=3e-2, rtol=3e-2)
    # The loss is accumulated in f32 inside the kernel -> tight tolerance.
    assert jnp.allclose(out["loss"], ref_loss, atol=5e-3, rtol=5e-3)
    assert jnp.allclose(train_out["loss"], ref_loss, atol=5e-3, rtol=5e-3)

    print("KERNEL_OK")
</pallas_src>

<mosaic_0001>
module attributes {stable_mosaic.version = 11 : i64} {
  func.func @_seg_logits_kernel(%arg0: i32, %arg1: memref<256x6xbf16, #tpu.memory_space<vmem>>, %arg2: memref<6x32xf32, #tpu.memory_space<vmem>>, %arg3: memref<1x32xf32, #tpu.memory_space<vmem>>, %arg4: memref<32x13xf32, #tpu.memory_space<vmem>>, %arg5: memref<1x13xf32, #tpu.memory_space<vmem>>, %arg6: memref<256x13xbf16, #tpu.memory_space<vmem>>) attributes {dimension_semantics = [#tpu.dimension_semantics<parallel>], iteration_bounds = array<i64: 1>, scalar_prefetch = 0 : i64, scratch_operands = 0 : i64, tpu.core_type = #tpu.core_type<tc>, window_params = [{transform_indices = @transform_0, window_bounds = array<i64: 256, 6>}, {pipeline_mode = #tpu.pipeline_mode<synchronous>, transform_indices = @transform_1, window_bounds = array<i64: 6, 32>}, {pipeline_mode = #tpu.pipeline_mode<synchronous>, transform_indices = @transform_2, window_bounds = array<i64: 1, 32>}, {pipeline_mode = #tpu.pipeline_mode<synchronous>, transform_indices = @transform_3, window_bounds = array<i64: 32, 13>}, {pipeline_mode = #tpu.pipeline_mode<synchronous>, transform_indices = @transform_4, window_bounds = array<i64: 1, 13>}, {transform_indices = @transform_5, window_bounds = array<i64: 256, 13>}]} {
    %c0 = arith.constant 0 : index
    %c0_0 = arith.constant 0 : index
    %0 = vector.load %arg1[%c0, %c0_0] : memref<256x6xbf16, #tpu.memory_space<vmem>>, vector<256x6xbf16>
    %1 = arith.extf %0 : vector<256x6xbf16> to vector<256x6xf32>
    %c0_1 = arith.constant 0 : index
    %c0_2 = arith.constant 0 : index
    %2 = vector.load %arg2[%c0_1, %c0_2] : memref<6x32xf32, #tpu.memory_space<vmem>>, vector<6x32xf32>
    %cst = arith.constant dense<0.000000e+00> : vector<256x32xf32>
    %3 = tpu.matmul %1, %2, %cst {dimension_numbers = #tpu.dot_dimension_numbers<[1], [0], [0], [1], [0, 0, 1, 1], [], []>} : vector<256x6xf32>, vector<6x32xf32>, vector<256x32xf32> -> vector<256x32xf32>
    %c0_3 = arith.constant 0 : index
    %c0_4 = arith.constant 0 : index
    %4 = vector.load %arg3[%c0_3, %c0_4] : memref<1x32xf32, #tpu.memory_space<vmem>>, vector<1x32xf32>
    %5 = vector.broadcast %4 : vector<1x32xf32> to vector<256x32xf32>
    %6 = arith.addf %3, %5 : vector<256x32xf32>
    %cst_5 = arith.constant 0.000000e+00 : f32
    %7 = vector.broadcast %cst_5 : f32 to vector<256x32xf32>
    %8 = arith.maximumf %6, %7 : vector<256x32xf32>
    %c0_6 = arith.constant 0 : index
    %c0_7 = arith.constant 0 : index
    %9 = vector.load %arg4[%c0_6, %c0_7] : memref<32x13xf32, #tpu.memory_space<vmem>>, vector<32x13xf32>
    %cst_8 = arith.constant dense<0.000000e+00> : vector<256x13xf32>
    %10 = tpu.matmul %8, %9, %cst_8 {dimension_numbers = #tpu.dot_dimension_numbers<[1], [0], [0], [1], [0, 0, 1, 1], [], []>} : vector<256x32xf32>, vector<32x13xf32>, vector<256x13xf32> -> vector<256x13xf32>
    %c0_9 = arith.constant 0 : index
    %c0_10 = arith.constant 0 : index
    %11 = vector.load %arg5[%c0_9, %c0_10] : memref<1x13xf32, #tpu.memory_space<vmem>>, vector<1x13xf32>
    %12 = vector.broadcast %11 : vector<1x13xf32> to vector<256x13xf32>
    %13 = arith.addf %10, %12 : vector<256x13xf32>
    %14 = arith.truncf %13 : vector<256x13xf32> to vector<256x13xbf16>
    %c0_11 = arith.constant 0 : index
    %c0_12 = arith.constant 0 : index
    %15 = vector.load %arg6[%c0_11, %c0_12] : memref<256x13xbf16, #tpu.memory_space<vmem>>, vector<256x13xbf16>
    tpu.vector_store %arg6[%c0_11, %c0_12], %14 {strides = array<i32>} : memref<256x13xbf16, #tpu.memory_space<vmem>>, vector<256x13xbf16>,
    return
  }
  func.func @transform_0(%arg0: i32) -> (i32, i32) {
    %c0_i32 = arith.constant 0 : i32
    %c0_i32_0 = arith.constant 0 : i32
    return %arg0, %c0_i32 : i32, i32
  }
  func.func @transform_1(%arg0: i32) -> (i32, i32) {
    %c0_i32 = arith.constant 0 : i32
    %c0_i32_0 = arith.constant 0 : i32
    %c0_i32_1 = arith.constant 0 : i32
    return %c0_i32, %c0_i32_0 : i32, i32
  }
  func.func @transform_2(%arg0: i32) -> (i32, i32) {
    %c0_i32 = arith.constant 0 : i32
    %c0_i32_0 = arith.constant 0 : i32
    %c0_i32_1 = arith.constant 0 : i32
    return %c0_i32, %c0_i32_0 : i32, i32
  }
  func.func @transform_3(%arg0: i32) -> (i32, i32) {
    %c0_i32 = arith.constant 0 : i32
    %c0_i32_0 = arith.constant 0 : i32
    %c0_i32_1 = arith.constant 0 : i32
    return %c0_i32, %c0_i32_0 : i32, i32
  }
  func.func @transform_4(%arg0: i32) -> (i32, i32) {
    %c0_i32 = arith.constant 0 : i32
    %c0_i32_0 = arith.constant 0 : i32
    %c0_i32_1 = arith.constant 0 : i32
    return %c0_i32, %c0_i32_0 : i32, i32
  }
  func.func @transform_5(%arg0: i32) -> (i32, i32) {
    %c0_i32 = arith.constant 0 : i32
    %c0_i32_0 = arith.constant 0 : i32
    return %arg0, %c0_i32 : i32, i32
  }
}

</mosaic_0001>

<bundles_post_ra>
// kernel: tpu_custom_call.1
= control target key start
LH: loop header
LB: loop body
LE: loop exit
PB: predicated region body
PF: predicated region fallthrough
CT: control target
= control target key end

     0   :  { %vm189_vm0 = vcmask 1045504   ;;  %vm92_vm1 = vcmask 48128   ;;  %vm461_vm2 = vcmask 261120   ;;  %vm911_vm3 = vcmask 101376   ;;  %s1700_s1 = inlined_call_operand.vmem [shape: f32[6,32], index: 1, kind: input, shape index: {}]   ;;  %s1701_s0 = inlined_call_operand.vmem [shape: bf16[256,6], index: 0, kind: input, shape index: {}]   ;;  %s1702_s3 = inlined_call_operand.vmem [shape: f32[32,13], index: 3, kind: input, shape index: {}]   ;;  %s1703_s2 = inlined_call_operand.vmem [shape: f32[1,32], index: 2, kind: input, shape index: {}]   ;;  %s1704_s4 = inlined_call_operand.vmem [shape: f32[1,13], index: 4, kind: input, shape index: {}]   ;;  %s1705_s5 = inlined_call_operand.vmem [shape: bf16[256,13], index: 5, kind: output, shape index: {}]  }
   0x1   :  { %v84_v0 = vld [vmem:[%s1700_s1] sm:$0x3f]  ;;  %v1143_v2 = vld [vmem:[%s1701_s0 + $0x8] sm:$0xff]   ;;  %v1144_v6 = vld [vmem:[%s1701_s0 + $0x10] sm:$0xff]  }
   0x2   :  { %v1080_v1 = vld [vmem:[%s1701_s0] sm:$0xff]   ;;  %1227 = vmatprep.subr.msk.mxu0 %vm189_vm0, %v84_v0  ;;  %v1085_v5 = vunpack.c.l.bf16 %v1143_v2  ;;  %v1086_v7 = vunpack.c.h.bf16 %v1143_v2  ;;  %v1089_v8 = vunpack.c.l.bf16 %v1144_v6  ;;  %v1145_v9 = vld [vmem:[%s1701_s0 + $0x18] sm:$0xff]   ;;  %v451_v11 = vld [vmem:[%s1702_s3 + $0x8] sm:$0xff]  ;;  %v1090_v12 = vunpack.c.h.bf16 %v1144_v6 }
   0x3   :  { %v1081_v3 = vunpack.c.l.bf16 %v1080_v1  ;;  %v1082_v4 = vunpack.c.h.bf16 %v1080_v1  ;;  %1228 = vmatpush3.msk.msra.mxu0 %vm189_vm0, %v84_v0  ;;  %v450_v10 = vld [vmem:[%s1702_s3] sm:$0xff]  ;;  %v1093_v13 = vunpack.c.l.bf16 %v1145_v9  ;;  %v1094_v16 = vunpack.c.h.bf16 %v1145_v9  ;;  %v1147_v18 = vld [vmem:[%s1701_s0 + $0x28] sm:$0xff]   ;;  %v1148_v21 = vld [vmem:[%s1701_s0 + $0x30] sm:$0xff]  }
   0x4   :  { %v1333_v14 = vpack.c.bf16 %v451_v11, %v450_v10  ;;  %v1146_v15 = vld [vmem:[%s1701_s0 + $0x20] sm:$0xff]   ;;  %v1101_v20 = vunpack.c.l.bf16 %v1147_v18  ;;  %v1102_v22 = vunpack.c.h.bf16 %v1147_v18  ;;  %v1105_v23 = vunpack.c.l.bf16 %v1148_v21  ;;  %v1149_v24 = vld [vmem:[%s1701_s0 + $0x38] sm:$0xff]   ;;  %v1151_v30 = vld [vmem:[%s1701_s0 + $0x48] sm:$0xff]  }
   0x5   :  { %1229 = vmatprep.mubr.msk.f32.mxu0 %vm92_vm1, %v1081_v3  ;;  %v1097_v17 = vunpack.c.l.bf16 %v1146_v15  ;;  %v1098_v19 = vunpack.c.h.bf16 %v1146_v15  ;;  %v1106_v25 = vunpack.c.h.bf16 %v1148_v21  ;;  %v1109_v26 = vunpack.c.l.bf16 %v1149_v24  ;;  %v1150_v27 = vld [vmem:[%s1701_s0 + $0x40] sm:$0xff]   ;;  %v1152_v33 = vld [vmem:[%s1701_s0 + $0x50] sm:$0xff]   ;;  %v1153_v36 = vld [vmem:[%s1701_s0 + $0x58] sm:$0xff]  }
   0x6   :  { %1230 = vmatmul.mubr.msk.f32.vlgmr.msra.gmra.mrb[0].mxu0 %vm92_vm1, %v1082_v4  ;;  %1334 = vmatprep.subr.bf16.mxu1 %v1333_v14  ;;  %v1110_v28 = vunpack.c.h.bf16 %v1149_v24  ;;  %v1113_v29 = vunpack.c.l.bf16 %v1150_v27  ;;  %v1114_v31 = vunpack.c.h.bf16 %v1150_v27  ;;  %v1117_v32 = vunpack.c.l.bf16 %v1151_v30  ;;  %v1154_v39 = vld [vmem:[%s1701_s0 + $0x60] sm:$0xff]   ;;  %v1155_v42 = vld [vmem:[%s1701_s0 + $0x68] sm:$0xff]   ;;  %v1156_v45 = vld [vmem:[%s1701_s0 + $0x70] sm:$0xff]  }
   0x7   :  { %1232 = vmatprep.mubr.msk.f32.mxu0 %vm92_vm1, %v1085_v5  ;;  %1336 = vmatpush3.bf16.msra.mxu1 %v1333_v14  ;;  %v1118_v34 = vunpack.c.h.bf16 %v1151_v30  ;;  %v1121_v35 = vunpack.c.l.bf16 %v1152_v33  ;;  %v1122_v37 = vunpack.c.h.bf16 %v1152_v33  ;;  %v1125_v38 = vunpack.c.l.bf16 %v1153_v36  ;;  %v1157_v48 = vld [vmem:[%s1701_s0 + $0x78] sm:$0xff]   ;;  %v452_v52 = vld [vmem:[%s1702_s3 + $0x10] sm:$0xff]  ;;  %v1469_v55 = vld [vmem:[%s1703_s2] ss:$0 sm:$0xff] }
   0x8   :  { %v1126_v40 = vunpack.c.h.bf16 %v1153_v36  ;;  %v1129_v41 = vunpack.c.l.bf16 %v1154_v39  ;;  %v1130_v43 = vunpack.c.h.bf16 %v1154_v39  ;;  %v1133_v44 = vunpack.c.l.bf16 %v1155_v42  ;;  %v453_v53 = vld [vmem:[%s1702_s3 + $0x18] sm:$0xff] }
   0x9   :  { %v1134_v46 = vunpack.c.h.bf16 %v1155_v42  ;;  %v1137_v47 = vunpack.c.l.bf16 %v1156_v45  ;;  %v1138_v49 = vunpack.c.h.bf16 %v1156_v45  ;;  %v1141_v50 = vunpack.c.l.bf16 %v1157_v48 }
   0xa   :  { %1233 = vmatmul.mubr.msk.f32.gmra.mrb[2].mxu0 %vm92_vm1, %v1086_v7  ;;  %v1142_v51 = vunpack.c.h.bf16 %v1157_v48  ;;  %v1337_v54 = vpack.c.bf16 %v453_v53, %v452_v52 }
   0xb   :  { %1235 = vmatprep.mubr.msk.f32.mxu0 %vm92_vm1, %v1089_v8 }
   0xc   :  { %1338 = vmatprep.subr.bf16.mxu1 %v1337_v54 }
   0xd   :  { %1340 = vmatpush3.bf16.msra.mxu1 %v1337_v54 }
   0xe   :  { %1236 = vmatmul.mubr.msk.f32.gmra.mrb[4].mxu0 %vm92_vm1, %v1090_v12 }
   0xf   :  { %1238 = vmatprep.mubr.msk.f32.mxu0 %vm92_vm1, %v1093_v13 }
  0x12   :  { %1239 = vmatmul.mubr.msk.f32.gmra.mrb[6].mxu0 %vm92_vm1, %v1094_v16 }
  0x13   :  { %1241 = vmatprep.mubr.msk.f32.mxu0 %vm92_vm1, %v1097_v17 }
  0x16   :  { %1242 = vmatmul.mubr.msk.f32.gmra.mrb[8].mxu0 %vm92_vm1, %v1098_v19 }
  0x17   :  { %1244 = vmatprep.mubr.msk.f32.mxu0 %vm92_vm1, %v1101_v20 }
  0x1a   :  { %1245 = vmatmul.mubr.msk.f32.gmra.mrb[10].mxu0 %vm92_vm1, %v1102_v22 }
  0x1b   :  { %1247 = vmatprep.mubr.msk.f32.mxu0 %vm92_vm1, %v1105_v23 }
  0x1e   :  { %1248 = vmatmul.mubr.msk.f32.gmra.mrb[12].mxu0 %vm92_vm1, %v1106_v25 }
  0x1f   :  { %1250 = vmatprep.mubr.msk.f32.mxu0 %vm92_vm1, %v1109_v26 }
  0x22   :  { %1251 = vmatmul.mubr.msk.f32.gmra.mrb[14].mxu0 %vm92_vm1, %v1110_v28 }
  0x23   :  { %1253 = vmatprep.mubr.msk.f32.mxu0 %vm92_vm1, %v1113_v29 }
  0x26   :  { %1254 = vmatmul.mubr.msk.f32.gmra.mrb[16].mxu0 %vm92_vm1, %v1114_v31 }
  0x27   :  { %1256 = vmatprep.mubr.msk.f32.mxu0 %vm92_vm1, %v1117_v32 }
  0x2a   :  { %1257 = vmatmul.mubr.msk.f32.gmra.mrb[18].mxu0 %vm92_vm1, %v1118_v34 }
  0x2b   :  { %1259 = vmatprep.mubr.msk.f32.mxu0 %vm92_vm1, %v1121_v35 }
  0x2e   :  { %1260 = vmatmul.mubr.msk.f32.gmra.mrb[20].mxu0 %vm92_vm1, %v1122_v37 }
  0x2f   :  { %1262 = vmatprep.mubr.msk.f32.mxu0 %vm92_vm1, %v1125_v38 }
  0x32   :  { %1263 = vmatmul.mubr.msk.f32.gmra.mrb[22].mxu0 %vm92_vm1, %v1126_v40 }
  0x33   :  { %1265 = vmatprep.mubr.msk.f32.mxu0 %vm92_vm1, %v1129_v41 }
  0x36   :  { %1266 = vmatmul.mubr.msk.f32.gmra.mrb[24].mxu0 %vm92_vm1, %v1130_v43 }
  0x37   :  { %1268 = vmatprep.mubr.msk.f32.mxu0 %vm92_vm1, %v1133_v44 }
  0x3a   :  { %1269 = vmatmul.mubr.msk.f32.gmra.mrb[26].mxu0 %vm92_vm1, %v1134_v46 }
  0x3b   :  { %1271 = vmatprep.mubr.msk.f32.mxu0 %vm92_vm1, %v1137_v47 }
  0x3e   :  { %1272 = vmatmul.mubr.msk.f32.gmra.mrb[28].mxu0 %vm92_vm1, %v1138_v49 }
  0x3f   :  { %1274 = vmatprep.mubr.msk.f32.mxu0 %vm92_vm1, %v1141_v50 }
  0x42   :  { %1275 = vmatmul.mubr.msk.f32.gmra.mrb[30].mxu0 %vm92_vm1, %v1142_v51 }
  0xd9   :  { %v1231_v56 = vpop.f32.mrb[0].mxu0 }
  0xda   :  { %v265_v57 = vadd.f32 %v1231_v56, %v1469_v55  ;;  %v259_v58 = vpop.f32.mrb[1].mxu0 }
  0xdb   :  { %v260_v59 = vadd.f32 %v1469_v55, %v259_v58 }
  0xdc   :  { %v419_v62 = vmax.f32 %v265_v57, 0.0 }
  0xdd   :  { %v418_v60 = vmax.f32 %v260_v59, 0.0  ;;  %v1234_v61 = vpop.f32.mrb[2].mxu0 }
  0xde   :  { %v275_v63 = vadd.f32 %v1234_v61, %v1469_v55  ;;  %v269_v0 = vpop.f32.mrb[3].mxu0 }
  0xdf   :  { %v270_v1 = vadd.f32 %v1469_v55, %v269_v0  ;;  %1285 = vmatprep.mubr.msk.f32.mxu1 %vm461_vm2, %v418_v60 }
  0xe0   :  { %1286 = vmatmul.mubr.msk.f32.vlgmr.msra.gmra.mrb[0].mxu1 %vm461_vm2, %v419_v62  ;;  %v421_v4 = vmax.f32 %v275_v63, 0.0 }
  0xe1   :  { %v420_v2 = vmax.f32 %v270_v1, 0.0  ;;  %v1237_v3 = vpop.f32.mrb[4].mxu0 }
  0xe2   :  { %v285_v5 = vadd.f32 %v1237_v3, %v1469_v55  ;;  %v279_v6 = vpop.f32.mrb[5].mxu0 }
  0xe3   :  { %v280_v7 = vadd.f32 %v1469_v55, %v279_v6  ;;  %1288 = vmatprep.mubr.msk.f32.mxu1 %vm461_vm2, %v420_v2 }
  0xe4   :  { %1289 = vmatmul.mubr.msk.f32.gmra.mrb[2].mxu1 %vm461_vm2, %v421_v4  ;;  %v423_v10 = vmax.f32 %v285_v5, 0.0 }
  0xe5   :  { %v422_v8 = vmax.f32 %v280_v7, 0.0  ;;  %v1240_v9 = vpop.f32.mrb[6].mxu0 }
  0xe6   :  { %v295_v11 = vadd.f32 %v1240_v9, %v1469_v55  ;;  %v289_v12 = vpop.f32.mrb[7].mxu0 }
  0xe7   :  { %v290_v13 = vadd.f32 %v1469_v55, %v289_v12  ;;  %1291 = vmatprep.mubr.msk.f32.mxu1 %vm461_vm2, %v422_v8 }
  0xe8   :  { %1292 = vmatmul.mubr.msk.f32.gmra.mrb[4].mxu1 %vm461_vm2, %v423_v10  ;;  %v425_v16 = vmax.f32 %v295_v11, 0.0 }
  0xe9   :  { %v424_v14 = vmax.f32 %v290_v13, 0.0  ;;  %v1243_v15 = vpop.f32.mrb[8].mxu0 }
  0xea   :  { %v305_v17 = vadd.f32 %v1243_v15, %v1469_v55  ;;  %v299_v18 = vpop.f32.mrb[9].mxu0 }
  0xeb   :  { %v300_v19 = vadd.f32 %v1469_v55, %v299_v18  ;;  %1294 = vmatprep.mubr.msk.f32.mxu1 %vm461_vm2, %v424_v14 }
  0xec   :  { %1295 = vmatmul.mubr.msk.f32.gmra.mrb[6].mxu1 %vm461_vm2, %v425_v16  ;;  %v427_v22 = vmax.f32 %v305_v17, 0.0 }
  0xed   :  { %v426_v20 = vmax.f32 %v300_v19, 0.0  ;;  %v1246_v21 = vpop.f32.mrb[10].mxu0 }
  0xee   :  { %v315_v23 = vadd.f32 %v1246_v21, %v1469_v55  ;;  %v309_v24 = vpop.f32.mrb[11].mxu0 }
  0xef   :  { %v310_v25 = vadd.f32 %v1469_v55, %v309_v24  ;;  %1297 = vmatprep.mubr.msk.f32.mxu1 %vm461_vm2, %v426_v20 }
  0xf0   :  { %1298 = vmatmul.mubr.msk.f32.gmra.mrb[8].mxu1 %vm461_vm2, %v427_v22  ;;  %v429_v28 = vmax.f32 %v315_v23, 0.0 }
  0xf1   :  { %v428_v26 = vmax.f32 %v310_v25, 0.0  ;;  %v1249_v27 = vpop.f32.mrb[12].mxu0  ;;  %v1538_v25 = vld [vmem:[%s1704_s4] ss:$0 sm:$0xff] }
  0xf2   :  { %v325_v29 = vadd.f32 %v1249_v27, %v1469_v55  ;;  %v319_v30 = vpop.f32.mrb[13].mxu0 }
  0xf3   :  { %v320_v31 = vadd.f32 %v1469_v55, %v319_v30  ;;  %1300 = vmatprep.mubr.msk.f32.mxu1 %vm461_vm2, %v428_v26 }
  0xf4   :  { %1301 = vmatmul.mubr.msk.f32.gmra.mrb[10].mxu1 %vm461_vm2, %v429_v28  ;;  %v431_v34 = vmax.f32 %v325_v29, 0.0 }
  0xf5   :  { %v430_v32 = vmax.f32 %v320_v31, 0.0  ;;  %v1252_v33 = vpop.f32.mrb[14].mxu0 }
  0xf6   :  { %v335_v35 = vadd.f32 %v1252_v33, %v1469_v55  ;;  %v329_v36 = vpop.f32.mrb[15].mxu0 }
  0xf7   :  { %v330_v37 = vadd.f32 %v1469_v55, %v329_v36  ;;  %1303 = vmatprep.mubr.msk.f32.mxu1 %vm461_vm2, %v430_v32 }
  0xf8   :  { %1304 = vmatmul.mubr.msk.f32.gmra.mrb[12].mxu1 %vm461_vm2, %v431_v34  ;;  %v433_v40 = vmax.f32 %v335_v35, 0.0 }
  0xf9   :  { %v432_v38 = vmax.f32 %v330_v37, 0.0  ;;  %v1255_v39 = vpop.f32.mrb[16].mxu0 }
  0xfa   :  { %v345_v41 = vadd.f32 %v1255_v39, %v1469_v55  ;;  %v339_v42 = vpop.f32.mrb[17].mxu0 }
  0xfb   :  { %v340_v43 = vadd.f32 %v1469_v55, %v339_v42  ;;  %1306 = vmatprep.mubr.msk.f32.mxu1 %vm461_vm2, %v432_v38 }
  0xfc   :  { %1307 = vmatmul.mubr.msk.f32.gmra.mrb[14].mxu1 %vm461_vm2, %v433_v40  ;;  %v435_v46 = vmax.f32 %v345_v41, 0.0 }
  0xfd   :  { %v434_v44 = vmax.f32 %v340_v43, 0.0  ;;  %v1258_v45 = vpop.f32.mrb[18].mxu0 }
  0xfe   :  { %v355_v47 = vadd.f32 %v1258_v45, %v1469_v55  ;;  %v349_v48 = vpop.f32.mrb[19].mxu0 }
  0xff   :  { %v350_v49 = vadd.f32 %v1469_v55, %v349_v48  ;;  %1309 = vmatprep.mubr.msk.f32.mxu1 %vm461_vm2, %v434_v44 }
 0x100   :  { %1310 = vmatmul.mubr.msk.f32.gmra.mrb[16].mxu1 %vm461_vm2, %v435_v46  ;;  %v437_v52 = vmax.f32 %v355_v47, 0.0 }
 0x101   :  { %v436_v50 = vmax.f32 %v350_v49, 0.0  ;;  %v1261_v51 = vpop.f32.mrb[20].mxu0 }
 0x102   :  { %v365_v53 = vadd.f32 %v1261_v51, %v1469_v55  ;;  %v359_v54 = vpop.f32.mrb[21].mxu0 }
 0x103   :  { %v360_v56 = vadd.f32 %v1469_v55, %v359_v54  ;;  %1312 = vmatprep.mubr.msk.f32.mxu1 %vm461_vm2, %v436_v50 }
 0x104   :  { %1313 = vmatmul.mubr.msk.f32.gmra.mrb[18].mxu1 %vm461_vm2, %v437_v52  ;;  %v439_v59 = vmax.f32 %v365_v53, 0.0 }
 0x105   :  { %v438_v57 = vmax.f32 %v360_v56, 0.0  ;;  %v1264_v58 = vpop.f32.mrb[22].mxu0 }
 0x106   :  { %v375_v60 = vadd.f32 %v1264_v58, %v1469_v55  ;;  %v369_v61 = vpop.f32.mrb[23].mxu0 }
 0x107   :  { %v370_v62 = vadd.f32 %v1469_v55, %v369_v61  ;;  %1315 = vmatprep.mubr.msk.f32.mxu1 %vm461_vm2, %v438_v57 }
 0x108   :  { %1316 = vmatmul.mubr.msk.f32.gmra.mrb[20].mxu1 %vm461_vm2, %v439_v59  ;;  %v441_v1 = vmax.f32 %v375_v60, 0.0 }
 0x109   :  { %v440_v63 = vmax.f32 %v370_v62, 0.0  ;;  %v1267_v0 = vpop.f32.mrb[24].mxu0 }
 0x10a   :  { %v385_v2 = vadd.f32 %v1267_v0, %v1469_v55  ;;  %v379_v3 = vpop.f32.mrb[25].mxu0 }
 0x10b   :  { %v380_v4 = vadd.f32 %v1469_v55, %v379_v3  ;;  %1318 = vmatprep.mubr.msk.f32.mxu1 %vm461_vm2, %v440_v63 }
 0x10c   :  { %1319 = vmatmul.mubr.msk.f32.gmra.mrb[22].mxu1 %vm461_vm2, %v441_v1  ;;  %v443_v7 = vmax.f32 %v385_v2, 0.0 }
 0x10d   :  { %v442_v5 = vmax.f32 %v380_v4, 0.0  ;;  %v1270_v6 = vpop.f32.mrb[26].mxu0 }
 0x10e   :  { %v395_v8 = vadd.f32 %v1270_v6, %v1469_v55  ;;  %v389_v9 = vpop.f32.mrb[27].mxu0 }
 0x10f   :  { %v390_v10 = vadd.f32 %v1469_v55, %v389_v9  ;;  %1321 = vmatprep.mubr.msk.f32.mxu1 %vm461_vm2, %v442_v5 }
 0x110   :  { %1322 = vmatmul.mubr.msk.f32.gmra.mrb[24].mxu1 %vm461_vm2, %v443_v7  ;;  %v445_v13 = vmax.f32 %v395_v8, 0.0 }
 0x111   :  { %v444_v11 = vmax.f32 %v390_v10, 0.0  ;;  %v1273_v12 = vpop.f32.mrb[28].mxu0 }
 0x112   :  { %v405_v14 = vadd.f32 %v1273_v12, %v1469_v55  ;;  %v399_v15 = vpop.f32.mrb[29].mxu0 }
 0x113   :  { %v400_v16 = vadd.f32 %v1469_v55, %v399_v15  ;;  %1324 = vmatprep.mubr.msk.f32.mxu1 %vm461_vm2, %v444_v11 }
 0x114   :  { %1325 = vmatmul.mubr.msk.f32.gmra.mrb[26].mxu1 %vm461_vm2, %v445_v13  ;;  %v447_v19 = vmax.f32 %v405_v14, 0.0 }
 0x115   :  { %v446_v17 = vmax.f32 %v400_v16, 0.0  ;;  %v1276_v18 = vpop.f32.mrb[30].mxu0 }
 0x116   :  { %v415_v20 = vadd.f32 %v1276_v18, %v1469_v55  ;;  %v409_v21 = vpop.f32.mrb[31].mxu0 }
 0x117   :  { %v410_v22 = vadd.f32 %v1469_v55, %v409_v21  ;;  %1327 = vmatprep.mubr.msk.f32.mxu1 %vm461_vm2, %v446_v17 }
 0x118   :  { %1328 = vmatmul.mubr.msk.f32.gmra.mrb[28].mxu1 %vm461_vm2, %v447_v19  ;;  %v449_v24 = vmax.f32 %v415_v20, 0.0 }
 0x119   :  { %v448_v23 = vmax.f32 %v410_v22, 0.0 }
 0x11b   :  { %1330 = vmatprep.mubr.msk.f32.mxu1 %vm461_vm2, %v448_v23 }
 0x11c   :  { %1331 = vmatmul.mubr.msk.f32.gmra.mrb[30].mxu1 %vm461_vm2, %v449_v24 }
 0x1b3   :  { %v1287_v26 = vpop.f32.mrb[0].mxu1 }
 0x1b4   :  { %v630_v27 = vadd.f32 %v1287_v26, %v1538_v25  ;;  %v624_v28 = vpop.f32.mrb[1].mxu1 }
 0x1b5   :  { %v625_v55 = vadd.f32 %v1538_v25, %v624_v28 }
 0x1b6   :  { %v1048_v29 = vpack.c.bf16 %v630_v27, %v630_v27 }
 0x1b7   :  { %v1047_v30 = vpack.c.bf16 %v625_v55, %v625_v55  ;;  %v1290_v31 = vpop.f32.mrb[2].mxu1 }
 0x1b8   :  { %913 = vst.msk [vmem:[%s1705_s5 + $0x4] sm:$0xf] %vm911_vm3, %v1048_v29  ;;  %v640_v32 = vadd.f32 %v1290_v31, %v1538_v25  ;;  %v634_v33 = vpop.f32.mrb[3].mxu1 }
 0x1b9   :  { %912 = vst.msk [vmem:[%s1705_s5] sm:$0xf] %vm911_vm3, %v1047_v30  ;;  %v635_v34 = vadd.f32 %v1538_v25, %v634_v33 }
 0x1ba   :  { %v1050_v35 = vpack.c.bf16 %v640_v32, %v640_v32 }
 0x1bb   :  { %v1049_v36 = vpack.c.bf16 %v635_v34, %v635_v34  ;;  %v1293_v37 = vpop.f32.mrb[4].mxu1 }
 0x1bc   :  { %915 = vst.msk [vmem:[%s1705_s5 + $0xc] sm:$0xf] %vm911_vm3, %v1050_v35  ;;  %v650_v38 = vadd.f32 %v1293_v37, %v1538_v25  ;;  %v644_v39 = vpop.f32.mrb[5].mxu1 }
 0x1bd   :  { %914 = vst.msk [vmem:[%s1705_s5 + $0x8] sm:$0xf] %vm911_vm3, %v1049_v36  ;;  %v645_v40 = vadd.f32 %v1538_v25, %v644_v39 }
 0x1be   :  { %v1052_v41 = vpack.c.bf16 %v650_v38, %v650_v38 }
 0x1bf   :  { %v1051_v42 = vpack.c.bf16 %v645_v40, %v645_v40  ;;  %v1296_v43 = vpop.f32.mrb[6].mxu1 }
 0x1c0   :  { %917 = vst.msk [vmem:[%s1705_s5 + $0x14] sm:$0xf] %vm911_vm3, %v1052_v41  ;;  %v660_v44 = vadd.f32 %v1296_v43, %v1538_v25  ;;  %v654_v45 = vpop.f32.mrb[7].mxu1 }
 0x1c1   :  { %916 = vst.msk [vmem:[%s1705_s5 + $0x10] sm:$0xf] %vm911_vm3, %v1051_v42  ;;  %v655_v46 = vadd.f32 %v1538_v25, %v654_v45 }
 0x1c2   :  { %v1054_v47 = vpack.c.bf16 %v660_v44, %v660_v44 }
 0x1c3   :  { %v1053_v48 = vpack.c.bf16 %v655_v46, %v655_v46  ;;  %v1299_v49 = vpop.f32.mrb[8].mxu1 }
 0x1c4   :  { %919 = vst.msk [vmem:[%s1705_s5 + $0x1c] sm:$0xf] %vm911_vm3, %v1054_v47  ;;  %v670_v50 = vadd.f32 %v1299_v49, %v1538_v25  ;;  %v664_v51 = vpop.f32.mrb[9].mxu1 }
 0x1c5   :  { %918 = vst.msk [vmem:[%s1705_s5 + $0x18] sm:$0xf] %vm911_vm3, %v1053_v48  ;;  %v665_v52 = vadd.f32 %v1538_v25, %v664_v51 }
 0x1c6   :  { %v1056_v53 = vpack.c.bf16 %v670_v50, %v670_v50 }
 0x1c7   :  { %v1055_v54 = vpack.c.bf16 %v665_v52, %v665_v52  ;;  %v1302_v56 = vpop.f32.mrb[10].mxu1 }
 0x1c8   :  { %921 = vst.msk [vmem:[%s1705_s5 + $0x24] sm:$0xf] %vm911_vm3, %v1056_v53  ;;  %v680_v57 = vadd.f32 %v1302_v56, %v1538_v25  ;;  %v674_v58 = vpop.f32.mrb[11].mxu1 }
 0x1c9   :  { %920 = vst.msk [vmem:[%s1705_s5 + $0x20] sm:$0xf] %vm911_vm3, %v1055_v54  ;;  %v675_v59 = vadd.f32 %v1538_v25, %v674_v58 }
 0x1ca   :  { %v1058_v60 = vpack.c.bf16 %v680_v57, %v680_v57 }
 0x1cb   :  { %v1057_v61 = vpack.c.bf16 %v675_v59, %v675_v59  ;;  %v1305_v62 = vpop.f32.mrb[12].mxu1 }
 0x1cc   :  { %923 = vst.msk [vmem:[%s1705_s5 + $0x2c] sm:$0xf] %vm911_vm3, %v1058_v60  ;;  %v690_v63 = vadd.f32 %v1305_v62, %v1538_v25  ;;  %v684_v0 = vpop.f32.mrb[13].mxu1 }
 0x1cd   :  { %922 = vst.msk [vmem:[%s1705_s5 + $0x28] sm:$0xf] %vm911_vm3, %v1057_v61  ;;  %v685_v1 = vadd.f32 %v1538_v25, %v684_v0 }
 0x1ce   :  { %v1060_v2 = vpack.c.bf16 %v690_v63, %v690_v63 }
 0x1cf   :  { %v1059_v3 = vpack.c.bf16 %v685_v1, %v685_v1  ;;  %v1308_v4 = vpop.f32.mrb[14].mxu1 }
 0x1d0   :  { %925 = vst.msk [vmem:[%s1705_s5 + $0x34] sm:$0xf] %vm911_vm3, %v1060_v2  ;;  %v700_v5 = vadd.f32 %v1308_v4, %v1538_v25  ;;  %v694_v6 = vpop.f32.mrb[15].mxu1 }
 0x1d1   :  { %924 = vst.msk [vmem:[%s1705_s5 + $0x30] sm:$0xf] %vm911_vm3, %v1059_v3  ;;  %v695_v7 = vadd.f32 %v1538_v25, %v694_v6 }
 0x1d2   :  { %v1062_v8 = vpack.c.bf16 %v700_v5, %v700_v5 }
 0x1d3   :  { %v1061_v9 = vpack.c.bf16 %v695_v7, %v695_v7  ;;  %v1311_v10 = vpop.f32.mrb[16].mxu1 }
 0x1d4   :  { %927 = vst.msk [vmem:[%s1705_s5 + $0x3c] sm:$0xf] %vm911_vm3, %v1062_v8  ;;  %v710_v11 = vadd.f32 %v1311_v10, %v1538_v25  ;;  %v704_v12 = vpop.f32.mrb[17].mxu1 }
 0x1d5   :  { %926 = vst.msk [vmem:[%s1705_s5 + $0x38] sm:$0xf] %vm911_vm3, %v1061_v9  ;;  %v705_v13 = vadd.f32 %v1538_v25, %v704_v12 }
 0x1d6   :  { %v1064_v14 = vpack.c.bf16 %v710_v11, %v710_v11 }
 0x1d7   :  { %v1063_v15 = vpack.c.bf16 %v705_v13, %v705_v13  ;;  %v1314_v16 = vpop.f32.mrb[18].mxu1 }
 0x1d8   :  { %929 = vst.msk [vmem:[%s1705_s5 + $0x44] sm:$0xf] %vm911_vm3, %v1064_v14  ;;  %v720_v17 = vadd.f32 %v1314_v16, %v1538_v25  ;;  %v714_v18 = vpop.f32.mrb[19].mxu1 }
 0x1d9   :  { %928 = vst.msk [vmem:[%s1705_s5 + $0x40] sm:$0xf] %vm911_vm3, %v1063_v15  ;;  %v715_v19 = vadd.f32 %v1538_v25, %v714_v18 }
 0x1da   :  { %v1066_v20 = vpack.c.bf16 %v720_v17, %v720_v17 }
 0x1db   :  { %v1065_v21 = vpack.c.bf16 %v715_v19, %v715_v19  ;;  %v1317_v22 = vpop.f32.mrb[20].mxu1 }
 0x1dc   :  { %931 = vst.msk [vmem:[%s1705_s5 + $0x4c] sm:$0xf] %vm911_vm3, %v1066_v20  ;;  %v730_v23 = vadd.f32 %v1317_v22, %v1538_v25  ;;  %v724_v24 = vpop.f32.mrb[21].mxu1 }
 0x1dd   :  { %930 = vst.msk [vmem:[%s1705_s5 + $0x48] sm:$0xf] %vm911_vm3, %v1065_v21  ;;  %v725_v26 = vadd.f32 %v1538_v25, %v724_v24 }
 0x1de   :  { %v1068_v27 = vpack.c.bf16 %v730_v23, %v730_v23 }
 0x1df   :  { %v1067_v28 = vpack.c.bf16 %v725_v26, %v725_v26  ;;  %v1320_v55 = vpop.f32.mrb[22].mxu1 }
 0x1e0   :  { %933 = vst.msk [vmem:[%s1705_s5 + $0x54] sm:$0xf] %vm911_vm3, %v1068_v27  ;;  %v740_v29 = vadd.f32 %v1320_v55, %v1538_v25  ;;  %v734_v30 = vpop.f32.mrb[23].mxu1 }
 0x1e1   :  { %932 = vst.msk [vmem:[%s1705_s5 + $0x50] sm:$0xf] %vm911_vm3, %v1067_v28  ;;  %v735_v31 = vadd.f32 %v1538_v25, %v734_v30 }
 0x1e2   :  { %v1070_v32 = vpack.c.bf16 %v740_v29, %v740_v29 }
 0x1e3   :  { %v1069_v33 = vpack.c.bf16 %v735_v31, %v735_v31  ;;  %v1323_v34 = vpop.f32.mrb[24].mxu1 }
 0x1e4   :  { %935 = vst.msk [vmem:[%s1705_s5 + $0x5c] sm:$0xf] %vm911_vm3, %v1070_v32  ;;  %v750_v35 = vadd.f32 %v1323_v34, %v1538_v25  ;;  %v744_v36 = vpop.f32.mrb[25].mxu1 }
 0x1e5   :  { %934 = vst.msk [vmem:[%s1705_s5 + $0x58] sm:$0xf] %vm911_vm3, %v1069_v33  ;;  %v745_v37 = vadd.f32 %v1538_v25, %v744_v36 }
 0x1e6   :  { %v1072_v38 = vpack.c.bf16 %v750_v35, %v750_v35 }
 0x1e7   :  { %v1071_v39 = vpack.c.bf16 %v745_v37, %v745_v37  ;;  %v1326_v40 = vpop.f32.mrb[26].mxu1 }
 0x1e8   :  { %937 = vst.msk [vmem:[%s1705_s5 + $0x64] sm:$0xf] %vm911_vm3, %v1072_v38  ;;  %v760_v41 = vadd.f32 %v1326_v40, %v1538_v25  ;;  %v754_v42 = vpop.f32.mrb[27].mxu1 }
 0x1e9   :  { %936 = vst.msk [vmem:[%s1705_s5 + $0x60] sm:$0xf] %vm911_vm3, %v1071_v39  ;;  %v755_v43 = vadd.f32 %v1538_v25, %v754_v42 }
 0x1ea   :  { %v1074_v44 = vpack.c.bf16 %v760_v41, %v760_v41 }
 0x1eb   :  { %v1073_v45 = vpack.c.bf16 %v755_v43, %v755_v43  ;;  %v1329_v46 = vpop.f32.mrb[28].mxu1 }
 0x1ec   :  { %939 = vst.msk [vmem:[%s1705_s5 + $0x6c] sm:$0xf] %vm911_vm3, %v1074_v44  ;;  %v770_v47 = vadd.f32 %v1329_v46, %v1538_v25  ;;  %v764_v48 = vpop.f32.mrb[29].mxu1 }
 0x1ed   :  { %938 = vst.msk [vmem:[%s1705_s5 + $0x68] sm:$0xf] %vm911_vm3, %v1073_v45  ;;  %v765_v49 = vadd.f32 %v1538_v25, %v764_v48 }
 0x1ee   :  { %v1076_v50 = vpack.c.bf16 %v770_v47, %v770_v47 }
 0x1ef   :  { %v1075_v51 = vpack.c.bf16 %v765_v49, %v765_v49  ;;  %v1332_v52 = vpop.f32.mrb[30].mxu1 }
 0x1f0   :  { %941 = vst.msk [vmem:[%s1705_s5 + $0x74] sm:$0xf] %vm911_vm3, %v1076_v50  ;;  %v780_v53 = vadd.f32 %v1332_v52, %v1538_v25  ;;  %v774_v54 = vpop.f32.mrb[31].mxu1 }
 0x1f1   :  { %940 = vst.msk [vmem:[%s1705_s5 + $0x70] sm:$0xf] %vm911_vm3, %v1075_v51  ;;  %v775_v56 = vadd.f32 %v1538_v25, %v774_v54 }
 0x1f2   :  { %v1078_v57 = vpack.c.bf16 %v780_v53, %v780_v53 }
 0x1f3   :  { %v1077_v58 = vpack.c.bf16 %v775_v56, %v775_v56 }
 0x1f4   :  { %943 = vst.msk [vmem:[%s1705_s5 + $0x7c] sm:$0xf] %vm911_vm3, %v1078_v57 }
 0x1f5   :  { %942 = vst.msk [vmem:[%s1705_s5 + $0x78] sm:$0xf] %vm911_vm3, %v1077_v58 }

</bundles_post_ra>
